<compile_context>
chip_gen: v6e
topology: v6e:2x2x1
jax: 0.10.0
libtpu: 0.0.40
codegen_flags: <defaults>
</compile_context>

<pallas_src>
import functools

import jax
import jax.numpy as jnp
import numpy as np
from jax.experimental import pallas as pl
from jax.experimental.pallas import tpu as pltpu


def _sinkhorn_dual_kernel(alpha_ref, wa_ref, wb_ref, m_ref,
                          obj_ref, grad_ref, obj_acc,
                          *, lam: float, tile_m: int, m_valid: int,
                          need_mask: bool):
    j = pl.program_id(0)
    last = pl.num_programs(0) - 1

    alpha = alpha_ref[...]          # (n, 1)
    wb = wb_ref[...]                # (1, tile_m)
    M = m_ref[...]                  # (n, tile_m)

    if lam == 1.0:
        D = alpha - M               # skip the lam multiply at trace time
    else:
        D = lam * (alpha - M)
    inv_lam = 1.0 / lam

    # Column-wise (axis 0) stabilized softmax numerator: ONE exp per element.
    d_max = jnp.max(D, axis=0, keepdims=True)        # (1, tile_m)
    E = jnp.exp(D - d_max)                           # (n, tile_m)
    colsum = jnp.sum(E, axis=0, keepdims=True)       # (1, tile_m)

    # lam * beta = log(wb) - logsumexp(D, axis=0); beta only feeds the obj term.
    lam_beta = jnp.log(wb) - d_max - jnp.log(colsum)  # (1, tile_m)
    beta = lam_beta if lam == 1.0 else lam_beta * inv_lam

    # T = exp(lam * (alpha + beta - M)) == E * wb / colsum  (no second exp).
    scale = wb / colsum                               # (1, tile_m)
    if need_mask:
        col = j * tile_m + jax.lax.broadcasted_iota(jnp.int32, (1, tile_m), 1)
        valid = col < m_valid
        scale = jnp.where(valid, scale, 0.0)
        beta_wb = jnp.sum(jnp.where(valid, beta * wb, 0.0))
    else:
        beta_wb = jnp.sum(beta * wb)

    T = E * scale                                     # (n, tile_m)
    row_part = jnp.sum(T, axis=1, keepdims=True)      # (n, 1)
    sum_t = jnp.sum(row_part)

    @pl.when(j == 0)
    def _init():
        wa = wa_ref[...]
        grad_ref[...] = -wa
        obj_acc[0] = -jnp.sum(alpha * wa)

    grad_ref[...] += row_part
    if lam == 1.0:
        obj_acc[0] += sum_t - beta_wb
    else:
        obj_acc[0] += sum_t * inv_lam - beta_wb

    @pl.when(j == last)
    def _fin():
        obj_ref[0] = obj_acc[0]


def _choose_tile(m: int, max_tile: int = 512):
    """Returns (tile_m, m_padded).  Tile is whole-m when small, else 512 lanes."""
    if m <= max_tile:
        return m, m
    m_pad = ((m + max_tile - 1) // max_tile) * max_tile
    return max_tile, m_pad


def sinkhorn_dual_forward(alpha, wa, wb, M, lam: float = 1.0):
    """Returns (obj, grad) matching SinkhornDual.forward."""
    n = wa.shape[0]
    m = wb.shape[0]
    tile_m, m_pad = _choose_tile(m)
    need_mask = m_pad != m

    alpha_c = alpha.reshape(n, 1).astype(jnp.float32)
    wa_c = wa.reshape(n, 1).astype(jnp.float32)
    wb_r = wb.reshape(1, m).astype(jnp.float32)
    M_f = M.astype(jnp.float32)
    if need_mask:
        pad = m_pad - m
        # Padded columns: wb=1 (log(1)=0, no NaN), M=0; masked out in-kernel.
        wb_r = jnp.pad(wb_r, ((0, 0), (0, pad)), constant_values=1.0)
        M_f = jnp.pad(M_f, ((0, 0), (0, pad)), constant_values=0.0)

    kernel = functools.partial(
        _sinkhorn_dual_kernel,
        lam=float(lam), tile_m=tile_m, m_valid=m, need_mask=need_mask)

    obj_out, grad_out = pl.pallas_call(
        kernel,
        grid=(m_pad // tile_m,),
        out_shape=(
            jax.ShapeDtypeStruct((1,), jnp.float32),      # obj (SMEM scalar)
            jax.ShapeDtypeStruct((n, 1), jnp.float32),    # grad
        ),
        in_specs=[
            pl.BlockSpec((n, 1), lambda j: (0, 0)),           # alpha
            pl.BlockSpec((n, 1), lambda j: (0, 0)),           # wa
            pl.BlockSpec((1, tile_m), lambda j: (0, j)),      # wb tile
            pl.BlockSpec((n, tile_m), lambda j: (0, j)),      # M tile
        ],
        out_specs=(
            pl.BlockSpec((1,), lambda j: (0,),
                         memory_space=pltpu.MemorySpace.SMEM),
            pl.BlockSpec((n, 1), lambda j: (0, 0)),           # resident accum
        ),
        scratch_shapes=[pltpu.SMEM((1,), jnp.float32)],
        compiler_params=pltpu.CompilerParams(
            dimension_semantics=("arbitrary",),   # m axis is a reduction
            vmem_limit_bytes=32 * 1024 * 1024),
    )(alpha_c, wa_c, wb_r, M_f)

    return obj_out[0], grad_out[:, 0]


def _reference_forward(alpha, wa, wb, M, lam=1.0):
    """Pure-JAX reference mirroring the PyTorch code."""
    D = lam * (alpha.reshape(-1, 1) - M)
    beta = (jnp.log(wb) - jax.scipy.special.logsumexp(D, axis=0)) / lam
    logT = lam * (alpha.reshape(-1, 1) + beta.reshape(1, -1) - M)
    T = jnp.exp(logT)
    t_rowsum = T.sum(axis=1)
    obj = -jnp.dot(alpha, wa) - jnp.dot(beta, wb) + t_rowsum.sum() / lam
    grad = t_rowsum - wa
    return obj, grad


def _check(alpha, wa, wb, M, lam):
    obj, grad = sinkhorn_dual_forward(alpha, wa, wb, M, lam=lam)
    obj, grad = jax.block_until_ready((obj, grad))
    obj_ref, grad_ref = _reference_forward(alpha, wa, wb, M, lam=lam)
    assert np.allclose(np.asarray(obj), np.asarray(obj_ref),
                       rtol=1e-5, atol=1e-5), (obj, obj_ref)
    assert np.allclose(np.asarray(grad), np.asarray(grad_ref),
                       rtol=1e-5, atol=1e-5)


if __name__ == "__main__":
    key = jax.random.PRNGKey(0)
    k_alpha, k_wa, k_wb, k_M, k2 = jax.random.split(key, 5)

    # Case 1: tiny module-default shape (single m-tile, lam = 1.0).
    n, m = 8, 16
    wa = jax.nn.softmax(jax.random.normal(k_wa, (n,), dtype=jnp.float32))
    wb = jax.nn.softmax(jax.random.normal(k_wb, (m,), dtype=jnp.float32))
    M = jnp.abs(jax.random.normal(k_M, (n, m), dtype=jnp.float32))
    alpha = 0.1 * jax.random.normal(k_alpha, (n,), dtype=jnp.float32)
    _check(alpha, wa, wb, M, lam=1.0)

    # Case 2: multi-tile path (m > 512, padded last tile) with lam != 1.
    n2, m2 = 16, 700
    k_a2, k_wa2, k_wb2, k_M2 = jax.random.split(k2, 4)
    wa2 = jax.nn.softmax(jax.random.normal(k_wa2, (n2,), dtype=jnp.float32))
    wb2 = jax.nn.softmax(jax.random.normal(k_wb2, (m2,), dtype=jnp.float32))
    M2 = jnp.abs(jax.random.normal(k_M2, (n2, m2), dtype=jnp.float32))
    alpha2 = 0.1 * jax.random.normal(k_a2, (n2,), dtype=jnp.float32)
    _check(alpha2, wa2, wb2, M2, lam=0.5)

    print("KERNEL_OK")
</pallas_src>

<mosaic_0001>
module attributes {stable_mosaic.version = 11 : i64} {
  func.func @_sinkhorn_dual_kernel(%arg0: i32, %arg1: memref<8x1xf32, #tpu.memory_space<vmem>>, %arg2: memref<8x1xf32, #tpu.memory_space<vmem>>, %arg3: memref<1x16xf32, #tpu.memory_space<vmem>>, %arg4: memref<8x16xf32, #tpu.memory_space<vmem>>, %arg5: memref<1xf32, #tpu.memory_space<smem>>, %arg6: memref<8x1xf32, #tpu.memory_space<vmem>>, %arg7: memref<1xf32, #tpu.memory_space<smem>>) attributes {dimension_semantics = [#tpu.dimension_semantics<arbitrary>], iteration_bounds = array<i64: 1>, scalar_prefetch = 0 : i64, scratch_operands = 1 : i64, tpu.core_type = #tpu.core_type<tc>, window_params = [{pipeline_mode = #tpu.pipeline_mode<synchronous>, transform_indices = @transform_0, window_bounds = array<i64: 8, 1>}, {pipeline_mode = #tpu.pipeline_mode<synchronous>, transform_indices = @transform_1, window_bounds = array<i64: 8, 1>}, {transform_indices = @transform_2, window_bounds = array<i64: 1, 16>}, {transform_indices = @transform_3, window_bounds = array<i64: 8, 16>}, {transform_indices = @transform_4, window_bounds = array<i64: 1>}, {pipeline_mode = #tpu.pipeline_mode<synchronous>, transform_indices = @transform_5, window_bounds = array<i64: 8, 1>}]} {
    %c0 = arith.constant 0 : index
    %c0_0 = arith.constant 0 : index
    %0 = vector.load %arg1[%c0, %c0_0] : memref<8x1xf32, #tpu.memory_space<vmem>>, vector<8x1xf32>
    %c0_1 = arith.constant 0 : index
    %c0_2 = arith.constant 0 : index
    %1 = vector.load %arg3[%c0_1, %c0_2] : memref<1x16xf32, #tpu.memory_space<vmem>>, vector<1x16xf32>
    %c0_3 = arith.constant 0 : index
    %c0_4 = arith.constant 0 : index
    %2 = vector.load %arg4[%c0_3, %c0_4] : memref<8x16xf32, #tpu.memory_space<vmem>>, vector<8x16xf32>
    %3 = vector.broadcast %0 : vector<8x1xf32> to vector<8x16xf32>
    %4 = arith.subf %3, %2 : vector<8x16xf32>
    %cst = arith.constant dense<0xFF800000> : vector<16xf32>
    %5 = vector.multi_reduction <maximumf>, %4, %cst [0] : vector<8x16xf32> to vector<16xf32>
    %6 = vector.shape_cast %5 : vector<16xf32> to vector<1x16xf32>
    %7 = vector.broadcast %6 : vector<1x16xf32> to vector<8x16xf32>
    %8 = arith.subf %4, %7 : vector<8x16xf32>
    %9 = math.exp %8 : vector<8x16xf32>
    %cst_5 = arith.constant dense<0.000000e+00> : vector<16xf32>
    %10 = vector.multi_reduction <add>, %9, %cst_5 [0] : vector<8x16xf32> to vector<16xf32>
    %11 = vector.shape_cast %10 : vector<16xf32> to vector<1x16xf32>
    %12 = math.log %1 : vector<1x16xf32>
    %13 = arith.subf %12, %6 : vector<1x16xf32>
    %14 = math.log %11 : vector<1x16xf32>
    %15 = arith.subf %13, %14 : vector<1x16xf32>
    %16 = arith.divf %1, %11 : vector<1x16xf32>
    %17 = arith.mulf %15, %1 : vector<1x16xf32>
    %18 = vector.shape_cast %17 : vector<1x16xf32> to vector<1x1x16xf32>
    %cst_6 = arith.constant dense<0.000000e+00> : vector<1xf32>
    %19 = vector.multi_reduction <add>, %18, %cst_6 [1, 2] : vector<1x1x16xf32> to vector<1xf32>
    %20 = vector.shape_cast %19 : vector<1xf32> to vector<1x1x1xf32>
    %21 = vector.extract %20[0, 0, 0] : f32 from vector<1x1x1xf32>
    %22 = vector.broadcast %16 : vector<1x16xf32> to vector<8x16xf32>
    %23 = arith.mulf %9, %22 : vector<8x16xf32>
    %cst_7 = arith.constant dense<0.000000e+00> : vector<8xf32>
    %24 = vector.multi_reduction <add>, %23, %cst_7 [1] : vector<8x16xf32> to vector<8xf32>
    %25 = vector.shape_cast %24 : vector<8xf32> to vector<8x1xf32>
    %26 = vector.shape_cast %25 : vector<8x1xf32> to vector<1x8x1xf32>
    %cst_8 = arith.constant dense<0.000000e+00> : vector<1xf32>
    %27 = vector.multi_reduction <add>, %26, %cst_8 [1, 2] : vector<1x8x1xf32> to vector<1xf32>
    %28 = vector.shape_cast %27 : vector<1xf32> to vector<1x1x1xf32>
    %29 = vector.extract %28[0, 0, 0] : f32 from vector<1x1x1xf32>
    %c0_i32 = arith.constant 0 : i32
    %30 = arith.cmpi eq, %arg0, %c0_i32 : i32
    %31 = arith.extui %30 : i1 to i32
    %c0_i32_9 = arith.constant 0 : i32
    %32 = arith.cmpi ne, %31, %c0_i32_9 : i32
    scf.if %32 {
      %c0_18 = arith.constant 0 : index
      %c0_19 = arith.constant 0 : index
      %43 = vector.load %arg2[%c0_18, %c0_19] : memref<8x1xf32, #tpu.memory_space<vmem>>, vector<8x1xf32>
      %cst_20 = arith.constant 0.000000e+00 : f32
      %44 = vector.broadcast %cst_20 : f32 to vector<8x1xf32>
      %45 = arith.subf %44, %43 : vector<8x1xf32>
      %c0_21 = arith.constant 0 : index
      %c0_22 = arith.constant 0 : index
      %46 = vector.load %arg6[%c0_21, %c0_22] : memref<8x1xf32, #tpu.memory_space<vmem>>, vector<8x1xf32>
      tpu.vector_store %arg6[%c0_21, %c0_22], %45 {strides = array<i32>} : memref<8x1xf32, #tpu.memory_space<vmem>>, vector<8x1xf32>,
      %47 = arith.mulf %0, %43 : vector<8x1xf32>
      %48 = vector.shape_cast %47 : vector<8x1xf32> to vector<1x8x1xf32>
      %cst_23 = arith.constant dense<0.000000e+00> : vector<1xf32>
      %49 = vector.multi_reduction <add>, %48, %cst_23 [1, 2] : vector<1x8x1xf32> to vector<1xf32>
      %50 = vector.shape_cast %49 : vector<1xf32> to vector<1x1x1xf32>
      %51 = vector.extract %50[0, 0, 0] : f32 from vector<1x1x1xf32>
      %cst_24 = arith.constant 0.000000e+00 : f32
      %52 = arith.subf %cst_24, %51 : f32
      %c0_25 = arith.constant 0 : index
      %53 = memref.load %arg7[%c0_25] : memref<1xf32, #tpu.memory_space<smem>>
      memref.store %52, %arg7[%c0_25] : memref<1xf32, #tpu.memory_space<smem>>
    } else {
    }
    %c0_10 = arith.constant 0 : index
    %c0_11 = arith.constant 0 : index
    %33 = vector.load %arg6[%c0_10, %c0_11] : memref<8x1xf32, #tpu.memory_space<vmem>>, vector<8x1xf32>
    %34 = arith.addf %33, %25 : vector<8x1xf32>
    %c0_12 = arith.constant 0 : index
    %c0_13 = arith.constant 0 : index
    %35 = vector.load %arg6[%c0_12, %c0_13] : memref<8x1xf32, #tpu.memory_space<vmem>>, vector<8x1xf32>
    tpu.vector_store %arg6[%c0_12, %c0_13], %34 {strides = array<i32>} : memref<8x1xf32, #tpu.memory_space<vmem>>, vector<8x1xf32>,
    %c0_14 = arith.constant 0 : index
    %36 = memref.load %arg7[%c0_14] : memref<1xf32, #tpu.memory_space<smem>>
    %37 = arith.subf %29, %21 : f32
    %38 = arith.addf %36, %37 : f32
    %c0_15 = arith.constant 0 : index
    %39 = memref.load %arg7[%c0_15] : memref<1xf32, #tpu.memory_space<smem>>
    memref.store %38, %arg7[%c0_15] : memref<1xf32, #tpu.memory_space<smem>>
    %c0_i32_16 = arith.constant 0 : i32
    %40 = arith.cmpi eq, %arg0, %c0_i32_16 : i32
    %41 = arith.extui %40 : i1 to i32
    %c0_i32_17 = arith.constant 0 : i32
    %42 = arith.cmpi ne, %41, %c0_i32_17 : i32
    scf.if %42 {
      %c0_18 = arith.constant 0 : index
      %43 = memref.load %arg7[%c0_18] : memref<1xf32, #tpu.memory_space<smem>>
      %c0_19 = arith.constant 0 : index
      %44 = memref.load %arg5[%c0_19] : memref<1xf32, #tpu.memory_space<smem>>
      memref.store %43, %arg5[%c0_19] : memref<1xf32, #tpu.memory_space<smem>>
    } else {
    }
    return
  }
  func.func @transform_0(%arg0: i32) -> (i32, i32) {
    %c0_i32 = arith.constant 0 : i32
    %c0_i32_0 = arith.constant 0 : i32
    %c0_i32_1 = arith.constant 0 : i32
    return %c0_i32, %c0_i32_0 : i32, i32
  }
  func.func @transform_1(%arg0: i32) -> (i32, i32) {
    %c0_i32 = arith.constant 0 : i32
    %c0_i32_0 = arith.constant 0 : i32
    %c0_i32_1 = arith.constant 0 : i32
    return %c0_i32, %c0_i32_0 : i32, i32
  }
  func.func @transform_2(%arg0: i32) -> (i32, i32) {
    %c0_i32 = arith.constant 0 : i32
    %c0_i32_0 = arith.constant 0 : i32
    return %c0_i32, %arg0 : i32, i32
  }
  func.func @transform_3(%arg0: i32) -> (i32, i32) {
    %c0_i32 = arith.constant 0 : i32
    %c0_i32_0 = arith.constant 0 : i32
    return %c0_i32, %arg0 : i32, i32
  }
  func.func @transform_4(%arg0: i32) -> i32 {
    %c0_i32 = arith.constant 0 : i32
    %c0_i32_0 = arith.constant 0 : i32
    return %c0_i32 : i32
  }
  func.func @transform_5(%arg0: i32) -> (i32, i32) {
    %c0_i32 = arith.constant 0 : i32
    %c0_i32_0 = arith.constant 0 : i32
    %c0_i32_1 = arith.constant 0 : i32
    return %c0_i32, %c0_i32_0 : i32, i32
  }
}

</mosaic_0001>

<bundles_post_ra>
// kernel: tpu_custom_call.1
= control target key start
LH: loop header
LB: loop body
LE: loop exit
PB: predicated region body
PF: predicated region fallthrough
CT: control target
= control target key end

     0   :  { %v167_v2 = vmov 0   ;;  %s230_s0 = inlined_call_operand.vmem [shape: f32[8,1], index: 0, kind: input, shape index: {}]   ;;  %s231_s1 = inlined_call_operand.vmem [shape: f32[8,1], index: 1, kind: input, shape index: {}]   ;;  %s232_s2 = inlined_call_operand.vmem [shape: f32[1,16], index: 2, kind: input, shape index: {}]   ;;  %s233_s3 = inlined_call_operand.vmem [shape: f32[8,16], index: 3, kind: input, shape index: {}]   ;;  %s234_s4 = inlined_call_operand.hbm [shape: f32[1], index: 4, kind: output, shape index: {0}]   ;;  %s235_s5 = inlined_call_operand.vmem [shape: f32[8,1], index: 5, kind: output, shape index: {1}]  }
   0x1   :  { %v20_v0 = vld [vmem:[%s230_s0] sm:$0xff]  ;;  %148 = vset.pattern.permute.xlu0 %v167_v2 }
   0x2   :  { %v92_v1 = vld [vmem:[%s231_s1] sm:$0xff] }
   0x3   :  { %v95_v3 = vmul.f32 %v92_v1, %v20_v0 }
   0x4   :  { %11 = vsyncpa [#allocation4], 0  ;;  %25 = vperm.xlu0 %148, %v20_v0   ;;  %v93_v4 = vsub.f32 0.0, %v92_v1  ;;  %vm77_vm0 = vcmask 7168   ;;  %v22_v5 = vld [vmem:[%s233_s3] sm:$0xff]  ;;  %vm29_vm1 = vcmask 130048   ;;  %v68_v26 = vlaneseq }
   0x5   :  { %v21_v22 = vld [vmem:[%s232_s2] sm:$0x1]  ;;  %vm56_vm2 = vcmask 122880   ;;  %v96_v48 = vsel %vm77_vm0, %v95_v3, 0.0  ;;  %s168_s8 = smov [#allocation3]  }
   0x6   :  { %94 = vst.msk [vmem:[%s235_s5] sm:$0xff] %vm77_vm0, %v93_v4  ;;  %v69_v28 = vshrl.u32 %v68_v26, 7 }
   0x8   :  { %v70_v30 = vsub.s32 0, %v69_v28 }
   0xd   :  { %v109_v42 = vld [vmem:[%s235_s5] sm:$0xff] }
  0x7f   :  { %v26_v6 = vpop.permute.xlu0 %25 }
  0x80   :  { %v28_v7 = vsub.f32 %v26_v6, %v22_v5 }
  0x82   :  { %v30_v8 = vsel %vm29_vm1, %v28_v7, -inf }
  0x83   :  { %v31_v9 = vrot.slane %v30_v8, 4 }
  0x85   :  { %v32_v10 = vmax.f32 %v30_v8, %v31_v9 }
  0x87   :  { %v33_v11 = vrot.slane %v32_v10, 2 }
  0x89   :  { %v34_v12 = vmax.f32 %v32_v10, %v33_v11 }
  0x8b   :  { %v35_v13 = vrot.slane %v34_v12, 1 }
  0x8d   :  { %v36_v14 = vmax.f32 %v34_v12, %v35_v13 }
  0x8f   :  { %v37_v15 = vsub.f32 %v28_v7, %v36_v14 }
  0x91   :  { %v38_v16 = vmul.f32 1.442695, %v37_v15 }
  0x93   :  { %149 = vpow2.f32 %v38_v16 }
  0x94   :  { %151 = vlog2.f32 %v21_v22 }
  0xa0   :  { %v150_v17 = vpop.eup %149 }
  0xa1   :  { %v40_v18 = vsel %vm29_vm1, %v150_v17, 0.0  ;;  %v152_v27 = vpop.eup %151 }
  0xa2   :  { %v41_v19 = vrot.slane %v40_v18, 4  ;;  %v48_v29 = vmul.f32 0.6931472, %v152_v27 }
  0xa4   :  { %v42_v20 = vadd.f32 %v41_v19, %v40_v18  ;;  %v49_v34 = vsub.f32 %v48_v29, %v36_v14 }
  0xa6   :  { %v43_v21 = vrot.slane %v42_v20, 2 }
  0xa8   :  { %v44_v23 = vadd.f32 %v43_v21, %v42_v20 }
  0xaa   :  { %v45_v24 = vrot.slane %v44_v23, 1 }
  0xac   :  { %v46_v25 = vadd.f32 %v45_v24, %v44_v23 }
  0xae   :  { %153 = vrcp.f32 %v46_v25 }
  0xaf   :  { %155 = vlog2.f32 %v46_v25 }
  0xbb   :  { %v154_v31 = vpop.eup %153 }
  0xbc   :  { %v156_v32 = vpop.eup %155  ;;  %v54_v33 = vmul.f32 %v154_v31, %v21_v22 }
  0xbd   :  { %v51_v35 = vmul.f32 0.6931472, %v156_v32 }
  0xbe   :  { %v71_v36 = vrot.slane %v54_v33, %v70_v30 }
  0xbf   :  { %v52_v37 = vsub.f32 %v49_v34, %v51_v35 }
  0xc0   :  { %v73_v38 = vmul.f32 %v150_v17, %v71_v36 }
  0xc1   :  { %v55_v39 = vmul.f32 %v52_v37, %v21_v22 }
  0xc2   :  { %v74_v40 = vsel %vm29_vm1, %v73_v38, 0.0 }
  0xc3   :  { %75 = vadd.xlane.f32.xlu0 %v74_v40  ;;  %v57_v41 = vsel %vm56_vm2, %v55_v39, 0.0 }
  0xc4   :  { %58 = vadd.xlane.f32.xlu1 %v57_v41 }
 0x14c   :  { %v76_v43 = vpop.xlane.xlu0 %75 }
 0x14d   :  { %v110_v44 = vadd.f32 %v109_v42, %v76_v43  ;;  %v59_v45 = vpop.xlane.xlu1 %58  ;;  %v78_v46 = vsel %vm77_vm0, %v76_v43, 0.0 }
 0x14e   :  { %v60_v47 = vrot.slane %v59_v45, 4  ;;  %79 = vadd.xlane.f32.xlu1 %v78_v46 }
 0x14f   :  { %111 = vst.msk [vmem:[%s235_s5] sm:$0xff] %vm77_vm0, %v110_v44 }
 0x150   :  { %v61_v49 = vadd.f32 %v60_v47, %v59_v45 }
 0x152   :  { %v62_v50 = vrot.slane %v61_v49, 2  ;;  %97 = vadd.xlane.f32.xlu1 %v96_v48 }
 0x154   :  { %v63_v51 = vadd.f32 %v62_v50, %v61_v49 }
 0x156   :  { %v64_v52 = vrot.slane %v63_v51, 1 }
 0x158   :  { %v65_v53 = vadd.f32 %v64_v52, %v63_v51 }
 0x15a   :  { %140 = vpush %v65_v53 }
 0x18b   :  { %s141_s5 = spop %140 }
 0x1d7   :  { %v80_v54 = vpop.xlane.xlu1 %79 }
 0x1d8   :  { %v81_v55 = vrot.slane %v80_v54, 4 }
 0x1da   :  { %v82_v56 = vadd.f32 %v81_v55, %v80_v54 }
 0x1db   :  { %v98_v57 = vpop.xlane.xlu1 %97 }
 0x1dc   :  { %v83_v58 = vrot.slane %v82_v56, 2  ;;  %v99_v59 = vrot.slane %v98_v57, 4 }
 0x1de   :  { %v100_v60 = vadd.f32 %v99_v59, %v98_v57  ;;  %v84_v61 = vadd.f32 %v83_v58, %v82_v56 }
 0x1e0   :  { %v101_v62 = vrot.slane %v100_v60, 2  ;;  %v85_v63 = vrot.slane %v84_v61, 1 }
 0x1e2   :  { %v102_v0 = vadd.f32 %v101_v62, %v100_v60  ;;  %v86_v1 = vadd.f32 %v85_v63, %v84_v61 }
 0x1e4   :  { %142 = vpush %v86_v1  ;;  %v103_v2 = vrot.slane %v102_v0, 1 }
 0x1e6   :  { %v104_v3 = vadd.f32 %v103_v2, %v102_v0 }
 0x1e8   :  { %144 = vpush %v104_v3 }
 0x215   :  { %s143_s28 = spop %142 }
 0x216   :  { %s113_s29 = ssub.f32 %s143_s28, %s141_s5 }
 0x219   :  { %s145_s30 = spop %144 }
 0x21a   :  { %s106_s6 = ssub.f32 0.0, %s145_s30 }
 0x21c   :  { %s114_s7 = sadd.f32 %s113_s29, %s106_s6 }
 0x21e   :  { %122 = sst [smem:[#allocation3]] %s114_s7 }
 0x21f   :  { %130 = dma.smem_to_hbm %s168_s8, 16, %s234_s4, [#allocation4]  }
 0x220   :  { %165 = dma.done.wait [#allocation4], 16  }
 0x221   :  { %166 = vsyncadd [#allocation4], 4294967280 }
 0x222   :  { %138 = sfence }
 0x223   :  { %139 = vsyncpa [#allocation4], 1 }

</bundles_post_ra>
